<compile_context>
chip_gen: v7x
topology: tpu7x:2x2x1
jax: 0.10.0
libtpu: 0.0.40
codegen_flags: <defaults>
</compile_context>

<pallas_src>
import functools
import re

import jax
import jax.numpy as jnp
from jax import lax
from jax.experimental import pallas as pl
from jax.experimental.pallas import tpu as pltpu

LANE = 128
SUBLANE = 8
BN_EPS = 1e-5


# ---------------------------------------------------------------------------
# Small host-side helpers
# ---------------------------------------------------------------------------

def _round_up(x, m):
    return (x + m - 1) // m * m


def _pad2d(a, rows, cols):
    r, c = a.shape
    if r == rows and c == cols:
        return a
    return jnp.pad(a, ((0, rows - r), (0, cols - c)))


def _bn_scale_shift(bn, eps=BN_EPS):
    scale = bn["gamma"] / jnp.sqrt(bn["var"] + eps)
    shift = bn["beta"] - bn["mean"] * scale
    return scale, shift


def _fold_bn_into_conv(w_oihw, bn, eps=BN_EPS):
    """Fold eval-mode BN (applied after the conv) into weights + bias."""
    cout = w_oihw.shape[0]
    if bn is None:
        return w_oihw, jnp.zeros((cout,), jnp.float32)
    scale, shift = _bn_scale_shift(bn, eps)
    return w_oihw * scale[:, None, None, None], shift


def _tf_same_pad(size, ksize, stride):
    """Mirrors TFSamepaddingLayer (pad derived from H, applied to H and W)."""
    if size % stride == 0:
        pad = max(ksize - stride, 0)
    else:
        pad = max(ksize - size % stride, 0)
    ps = pad // 2
    return ps, pad - ps


@functools.lru_cache(maxsize=1)
def _tpu_generation():
    try:
        kind = jax.devices()[0].device_kind
    except Exception:
        return 6
    m = re.search(r"(\d+)", kind)
    return int(m.group(1)) if m else 6


def _vmem_limit_bytes(gen):
    if gen >= 7:
        return 48 << 20      # v7x: 64 MiB physical VMEM -> stay conservative
    if gen >= 5:
        return 64 << 20      # v5e / v6e: 128 MiB physical
    return 16 << 20          # older chips: be safe


def _divisor_tile(total, cap, align):
    """Largest multiple of `align` (falling back to 128) dividing `total`, <= cap."""
    cap = min(cap, total)
    for a in (align, LANE):
        best = 0
        t = a
        while t <= cap:
            if total % t == 0:
                best = t
            t += a
        if best:
            return best
    return total


def _plan_matmul_tiles(M, K_pad, C_pad, gen):
    align = 256 if gen >= 6 else 128          # v6e/v7x MXU is 2x256x256
    budget = int(_vmem_limit_bytes(gen) * 0.8)
    tn = _divisor_tile(C_pad, 512, align)
    m_cap = 512 if gen >= 7 else 1024          # bigger tiles on v5e/v6e (more VMEM)
    tm = min(_round_up(M, SUBLANE), m_cap)
    tk = K_pad                                 # prefer fully-resident weight (nk == 1)

    def need(tm_, tk_):
        # double-buffered bf16 inputs/outputs + f32 acc scratch (worst case)
        return 2 * (2 * tm_ * tk_ + 2 * tk_ * tn + 4 * tm_ * tn) + 4 * tm_ * tn

    while need(tm, tk) > budget and tm > 256:
        tm = max(256, _round_up(tm // 2, SUBLANE))
    if need(tm, tk) > budget:
        tk = _divisor_tile(K_pad, 512, align)  # K-tiled fallback (weight re-streamed)
    return tm, tk, tn


# ---------------------------------------------------------------------------
# Path A kernel: (M,K)x(K,Cout) matmul with fused prologue / epilogue
# ---------------------------------------------------------------------------

def _matmul_conv_kernel(*refs, has_pre, has_res, has_post, relu, multi_k):
    it = iter(refs)
    x_ref = next(it)
    w_ref = next(it)
    b_ref = next(it)
    pre_s = next(it) if has_pre else None
    pre_t = next(it) if has_pre else None
    r_ref = next(it) if has_res else None
    po_s = next(it) if has_post else None
    po_t = next(it) if has_post else None
    o_ref = next(it)
    acc_ref = next(it) if multi_k else None

    x = x_ref[...]
    if has_pre:
        # Pre-activation BN + ReLU fused as a prologue on the conv input tile.
        # (kept in f32 for accuracy; on v6e/v7x this could run in bf16 on the VALU)
        xf = x.astype(jnp.float32) * pre_s[...] + pre_t[...]
        x = jnp.maximum(xf, 0.0).astype(x_ref.dtype)

    prod = jnp.dot(x, w_ref[...], preferred_element_type=jnp.float32)

    def epilogue(acc):
        y = acc + b_ref[...]
        if has_res:
            y = y + r_ref[...].astype(jnp.float32)
        if has_post:
            y = y * po_s[...] + po_t[...]
        if relu:
            y = jnp.maximum(y, 0.0)
        o_ref[...] = y.astype(o_ref.dtype)

    if not multi_k:
        # Single K step: no accumulator round trip at all.
        epilogue(prod)
    else:
        k = pl.program_id(2)

        @pl.when(k == 0)
        def _():
            acc_ref[...] = prod        # write, not zero-init + add

        @pl.when(k != 0)
        def _():
            acc_ref[...] += prod

        @pl.when(k == pl.num_programs(2) - 1)
        def _():
            epilogue(acc_ref[...])


def _matmul_fused_pallas(x2, w_mat, bias, *, pre=None, residual=None, post=None,
                         relu=False, compute_dtype=jnp.bfloat16):
    """(M,K)@(K,Cout) + fused BN/residual/ReLU epilogue. Returns (M, Cout)."""
    M, K = x2.shape
    K_w, Cout = w_mat.shape
    assert K == K_w
    gen = _tpu_generation()

    K_pad = _round_up(K, LANE)
    C_pad = _round_up(Cout, LANE)
    tm, tk, tn = _plan_matmul_tiles(M, K_pad, C_pad, gen)
    M_pad = _round_up(M, tm)
    nn, nm, nk = C_pad // tn, M_pad // tm, K_pad // tk
    multi_k = nk > 1

    x_p = _pad2d(x2.astype(compute_dtype), M_pad, K_pad)
    w_p = _pad2d(w_mat.astype(compute_dtype), K_pad, C_pad)
    b_p = _pad2d(bias.astype(jnp.float32).reshape(1, Cout), 1, C_pad)

    # Grid order: Cout tile (parallel, outer) -> M tile (parallel) -> K tile (inner).
    # With nk == 1 the weight block index (k, j) is constant across the inner M loop,
    # so the folded weight is fetched only nn times in total (resident in VMEM).
    in_specs = [
        pl.BlockSpec((tm, tk), lambda j, m, k: (m, k)),   # activations
        pl.BlockSpec((tk, tn), lambda j, m, k: (k, j)),   # folded conv weight
        pl.BlockSpec((1, tn), lambda j, m, k: (0, j)),    # folded BN bias
    ]
    args = [x_p, w_p, b_p]

    if pre is not None:
        s, t = pre                                        # per-K f32 vectors
        args += [_pad2d(s.reshape(1, K), 1, K_pad), _pad2d(t.reshape(1, K), 1, K_pad)]
        in_specs += [pl.BlockSpec((1, tk), lambda j, m, k: (0, k))] * 2

    if residual is not None:
        args.append(_pad2d(residual.astype(compute_dtype), M_pad, C_pad))
        in_specs.append(pl.BlockSpec((tm, tn), lambda j, m, k: (m, j)))

    if post is not None:
        s, t = post
        args += [_pad2d(s.reshape(1, Cout), 1, C_pad),
                 _pad2d(t.reshape(1, Cout), 1, C_pad)]
        in_specs += [pl.BlockSpec((1, tn), lambda j, m, k: (0, j))] * 2

    kernel = functools.partial(
        _matmul_conv_kernel,
        has_pre=pre is not None, has_res=residual is not None,
        has_post=post is not None, relu=relu, multi_k=multi_k)

    bytes_accessed = 2 * (x_p.size + w_p.size + M_pad * C_pad)
    if residual is not None:
        bytes_accessed += 2 * M_pad * C_pad
    cost = pl.CostEstimate(flops=2 * M_pad * K_pad * C_pad, transcendentals=0,
                           bytes_accessed=int(bytes_accessed))

    out = pl.pallas_call(
        kernel,
        out_shape=jax.ShapeDtypeStruct((M_pad, C_pad), compute_dtype),
        grid_spec=pltpu.PrefetchScalarGridSpec(
            num_scalar_prefetch=0,
            grid=(nn, nm, nk),
            in_specs=in_specs,
            out_specs=pl.BlockSpec((tm, tn), lambda j, m, k: (m, j)),
            scratch_shapes=([pltpu.VMEM((tm, tn), jnp.float32)] if multi_k else []),
        ),
        compiler_params=pltpu.CompilerParams(
            dimension_semantics=("parallel", "parallel", "arbitrary"),
            vmem_limit_bytes=_vmem_limit_bytes(gen),
        ),
        cost_estimate=cost,
    )(*args)

    return out[:M, :Cout]


# ---------------------------------------------------------------------------
# Path B kernel: stride-1 kxk conv streamed through VMEM with a halo DMA
# ---------------------------------------------------------------------------

def _rowconv_kernel(x_hbm, w_ref, b_ref, o_ref, xbuf, sem, *,
                    taps, wp, th_out, buf_rows, n_row_tiles, relu):
    g = pl.program_id(0)
    row_step = th_out * wp

    def start_fetch(step, slot):
        n = step // n_row_tiles
        r = step - n * n_row_tiles
        pltpu.make_async_copy(
            x_hbm.at[n, pl.ds(r * row_step, buf_rows)],
            xbuf.at[slot], sem.at[slot]).start()

    @pl.when(g == 0)
    def _():
        start_fetch(0, 0)

    slot = g % 2
    pltpu.make_async_copy(
        x_hbm.at[0, pl.ds(0, buf_rows)], xbuf.at[slot], sem.at[slot]).wait()

    # Prefetch the next row tile while this one is being computed.
    @pl.when(g + 1 < pl.num_programs(0))
    def _():
        start_fetch(g + 1, 1 - slot)

    x = xbuf[slot]                        # (buf_rows, Cin_pad) row-flattened window
    acc = None
    for t, (ih, iw) in enumerate(taps):   # shifted in-VMEM windows, no HBM im2col
        off = ih * wp + iw
        xt = x[off:off + row_step, :]
        p = jnp.dot(xt, w_ref[t], preferred_element_type=jnp.float32)
        acc = p if acc is None else acc + p
    y = acc + b_ref[...]
    if relu:
        y = jnp.maximum(y, 0.0)
    o_ref[...] = y.astype(o_ref.dtype)


def _conv_rows_pallas(x_nhwc, w_oihw, *, bn, relu, eps=BN_EPS,
                      compute_dtype=jnp.bfloat16):
    """kxk stride-1 conv with TF 'same' padding, folded BN, optional ReLU."""
    N, H, W, Cin = x_nhwc.shape
    Cout, Cin_w, kH, kW = w_oihw.shape
    assert Cin == Cin_w
    gen = _tpu_generation()

    ps, pe = _tf_same_pad(H, kH, 1)
    Hp, Wp0 = H + ps + pe, W + ps + pe
    Ho, Wo = Hp - kH + 1, Wp0 - kW + 1
    Wp = _round_up(Wp0, SUBLANE)
    Cin_pad = _round_up(Cin, LANE)
    C_pad = _round_up(Cout, LANE)

    # Row-tile plan: th_out output rows per grid step (halo of kH-1 rows re-read).
    th_out = min(Ho, max(8, -(-512 // Wp)))
    budget = int(_vmem_limit_bytes(gen) * 0.6)

    def need(th):
        brows = (th + kH - 1 + (1 if kW > 1 else 0)) * Wp
        return (2 * brows * Cin_pad + 2 * kH * kW * Cin_pad * C_pad
                + 4 * th * Wp * C_pad) * 2 + 4 * th * Wp * C_pad

    while th_out > 1 and need(th_out) > budget:
        th_out -= 1
    R = -(-Ho // th_out)

    row_step = th_out * Wp
    buf_rows = (th_out + kH - 1 + (1 if kW > 1 else 0)) * Wp
    H_need = (R - 1) * th_out + buf_rows // Wp

    xp = jnp.pad(x_nhwc.astype(compute_dtype),
                 ((0, 0), (ps, H_need - H - ps), (ps, Wp - W - ps),
                  (0, Cin_pad - Cin)))
    x_flat = xp.reshape(N, H_need * Wp, Cin_pad)

    w_folded, bias = _fold_bn_into_conv(w_oihw, bn, eps)
    w_taps = jnp.transpose(w_folded, (2, 3, 1, 0)).reshape(kH * kW, Cin, Cout)
    w_taps = jnp.pad(w_taps.astype(compute_dtype),
                     ((0, 0), (0, Cin_pad - Cin), (0, C_pad - Cout)))
    b_p = _pad2d(bias.astype(jnp.float32).reshape(1, Cout), 1, C_pad)

    taps = tuple((ih, iw) for ih in range(kH) for iw in range(kW))
    kernel = functools.partial(
        _rowconv_kernel, taps=taps, wp=Wp, th_out=th_out, buf_rows=buf_rows,
        n_row_tiles=R, relu=relu)

    cost = pl.CostEstimate(
        flops=2 * N * Ho * Wo * kH * kW * Cin * Cout, transcendentals=0,
        bytes_accessed=int(2 * (x_flat.size + w_taps.size + N * R * row_step * C_pad)))

    out = pl.pallas_call(
        kernel,
        out_shape=jax.ShapeDtypeStruct((N * R * row_step, C_pad), compute_dtype),
        grid_spec=pltpu.PrefetchScalarGridSpec(
            num_scalar_prefetch=0,
            grid=(N * R,),
            in_specs=[
                pl.BlockSpec(memory_space=pl.ANY),                       # activation (HBM)
                pl.BlockSpec((kH * kW, Cin_pad, C_pad), lambda g: (0, 0, 0)),  # resident W
                pl.BlockSpec((1, C_pad), lambda g: (0, 0)),              # folded BN bias
            ],
            out_specs=pl.BlockSpec((row_step, C_pad), lambda g: (g, 0)),
            scratch_shapes=[
                pltpu.VMEM((2, buf_rows, Cin_pad), compute_dtype),       # halo double-buffer
                pltpu.SemaphoreType.DMA((2,)),
            ],
        ),
        compiler_params=pltpu.CompilerParams(
            dimension_semantics=("arbitrary",),      # manual cross-step double-buffering
            vmem_limit_bytes=_vmem_limit_bytes(gen),
        ),
        cost_estimate=cost,
    )(x_flat, w_taps, b_p)

    return out.reshape(N, R * th_out, Wp, C_pad)[:, :Ho, :Wo, :Cout]


# ---------------------------------------------------------------------------
# Conv dispatcher (Pallas)
# ---------------------------------------------------------------------------

def conv_bn_act_pallas(x_nhwc, w_oihw, *, stride=1, same_pad=False, bn=None,
                       relu=False, pre_bn=None, residual=None, post_bn=None,
                       eps=BN_EPS, compute_dtype=jnp.bfloat16):
    N, H, W, Cin = x_nhwc.shape
    Cout, Cin_w, kH, kW = w_oihw.shape
    assert Cin == Cin_w

    # Stride-1 spatial conv (conv2): halo-streamed kernel, no HBM im2col.
    if (kH > 1 or kW > 1) and stride == 1 and same_pad and \
            pre_bn is None and residual is None and post_bn is None:
        return _conv_rows_pallas(x_nhwc, w_oihw, bn=bn, relu=relu, eps=eps,
                                 compute_dtype=compute_dtype)

    w_folded, bias = _fold_bn_into_conv(w_oihw, bn, eps)
    w_mat = jnp.transpose(w_folded, (2, 3, 1, 0)).reshape(kH * kW * Cin, Cout)

    if kH == 1 and kW == 1:
        # TODO(synk): fold the shortcut stride into the kernel DMA/index_map instead
        #             of materialising the strided slice in HBM.
        xs = x_nhwc[:, ::stride, ::stride, :] if stride > 1 else x_nhwc
        Ho, Wo = xs.shape[1], xs.shape[2]
        x2 = xs.reshape(N * Ho * Wo, Cin)
    else:
        # Strided spatial conv fallback (first unit of a downsampling block).
        # TODO(synk): in-kernel strided tap windows would remove this HBM im2col too.
        if same_pad:
            assert H == W, "TFSamepaddingLayer assumes square inputs"
            ps, pe = _tf_same_pad(H, kH, stride)
        else:
            ps, pe = 0, 0
        xp = jnp.pad(x_nhwc, ((0, 0), (ps, pe), (ps, pe), (0, 0)))
        Hp, Wpd = xp.shape[1], xp.shape[2]
        Ho = (Hp - kH) // stride + 1
        Wo = (Wpd - kW) // stride + 1
        taps = []
        for kh in range(kH):
            for kw in range(kW):
                t = lax.slice(
                    xp, (0, kh, kw, 0),
                    (N, kh + stride * (Ho - 1) + 1, kw + stride * (Wo - 1) + 1, Cin),
                    (1, stride, stride, 1))
                taps.append(t.reshape(N * Ho * Wo, Cin))
        x2 = jnp.concatenate(taps, axis=-1)

    pre = None
    if pre_bn is not None:
        s, t = _bn_scale_shift(pre_bn, eps)
        pre = (jnp.tile(s, kH * kW), jnp.tile(t, kH * kW))   # per-K, tap-major

    res2 = None if residual is None else residual.reshape(N * Ho * Wo, Cout)
    post = None if post_bn is None else _bn_scale_shift(post_bn, eps)

    out2 = _matmul_fused_pallas(x2, w_mat, bias, pre=pre, residual=res2,
                                post=post, relu=relu, compute_dtype=compute_dtype)
    return out2.reshape(N, Ho, Wo, Cout)


# ---------------------------------------------------------------------------
# Reference conv (lax.conv), mirroring the same cast / fold points
# ---------------------------------------------------------------------------

def conv_bn_act_ref(x_nhwc, w_oihw, *, stride=1, same_pad=False, bn=None,
                    relu=False, pre_bn=None, residual=None, post_bn=None,
                    eps=BN_EPS, compute_dtype=jnp.float32):
    Cout, Cin, kH, kW = w_oihw.shape
    w_folded, bias = _fold_bn_into_conv(w_oihw, bn, eps)

    x = x_nhwc
    if pre_bn is not None:
        s, t = _bn_scale_shift(pre_bn, eps)
        x = jnp.maximum(x.astype(jnp.float32) * s + t, 0.0)
    if same_pad:
        ps, pe = _tf_same_pad(x.shape[1], kH, stride)
        pad = [(ps, pe), (ps, pe)]
    else:
        pad = [(0, 0), (0, 0)]
    w_hwio = jnp.transpose(w_folded, (2, 3, 1, 0)).astype(compute_dtype)
    y = lax.conv_general_dilated(
        x.astype(compute_dtype), w_hwio, (stride, stride), pad,
        dimension_numbers=("NHWC", "HWIO", "NHWC"),
        preferred_element_type=jnp.float32)
    y = y + bias
    if residual is not None:
        y = y + residual.astype(compute_dtype).astype(jnp.float32)
    if post_bn is not None:
        s, t = _bn_scale_shift(post_bn, eps)
        y = y * s + t
    if relu:
        y = jnp.maximum(y, 0.0)
    return y.astype(compute_dtype)


# ---------------------------------------------------------------------------
# ResidualBlock forward (shared structure; conv_fn = Pallas or reference)
# ---------------------------------------------------------------------------

def _block_forward(x_nchw, params, conv_fn):
    x = jnp.transpose(x_nchw, (0, 2, 3, 1)).astype(jnp.float32)   # NCHW -> NHWC
    stride = params["stride"]
    units = params["units"]
    nr = len(units)

    if params["shortcut_w"] is not None:
        shortcut = conv_fn(x, params["shortcut_w"], stride=stride)
    else:
        shortcut = x

    prev = x
    for idx, u in enumerate(units):
        is_last = idx == nr - 1
        h = conv_fn(prev, u["conv1_w"],
                    pre_bn=u["preact_bn"] if idx != 0 else None,
                    bn=u["conv1_bn"], relu=True)
        h = conv_fn(h, u["conv2_w"], stride=stride if idx == 0 else 1,
                    same_pad=True, bn=u["conv2_bn"], relu=True)
        # conv3 fuses the residual add; for the last unit it also fuses blk_bna.
        prev = conv_fn(h, u["conv3_w"], residual=shortcut,
                       post_bn=params["blk_bn"] if is_last else None,
                       relu=is_last)
        shortcut = prev
    return jnp.transpose(prev.astype(jnp.float32), (0, 3, 1, 2))  # NHWC -> NCHW


def residual_block_forward(x_nchw, params, compute_dtype=jnp.bfloat16):
    conv_fn = functools.partial(conv_bn_act_pallas, compute_dtype=compute_dtype)
    return _block_forward(x_nchw, params, conv_fn)


def reference_forward(x_nchw, params, compute_dtype=jnp.float32):
    conv_fn = functools.partial(conv_bn_act_ref, compute_dtype=compute_dtype)
    return _block_forward(x_nchw, params, conv_fn)


# ---------------------------------------------------------------------------
# Deterministic parameter initialization (shapes follow ResidualBlock.__init__)
# ---------------------------------------------------------------------------

def init_params(key, in_ch, unit_ksize, unit_ch, unit_count, stride):
    keys = iter(jax.random.split(key, 64))

    def conv_w(cout, cin, k):
        fan_out = cout * k * k                      # kaiming-normal, fan_out, relu
        std = (2.0 / fan_out) ** 0.5
        return std * jax.random.normal(next(keys), (cout, cin, k, k), jnp.float32)

    def bn(c):
        return {
            "gamma": 1.0 + 0.1 * jax.random.normal(next(keys), (c,), jnp.float32),
            "beta": 0.1 * jax.random.normal(next(keys), (c,), jnp.float32),
            "mean": 0.1 * jax.random.normal(next(keys), (c,), jnp.float32),
            "var": jax.random.uniform(next(keys), (c,), jnp.float32, 0.5, 1.5),
        }

    units = []
    unit_in = in_ch
    for idx in range(unit_count):
        u = {}
        if idx != 0:
            u["preact_bn"] = bn(unit_in)
        u["conv1_w"] = conv_w(unit_ch[0], unit_in, unit_ksize[0])
        u["conv1_bn"] = bn(unit_ch[0])
        u["conv2_w"] = conv_w(unit_ch[1], unit_ch[0], unit_ksize[1])
        u["conv2_bn"] = bn(unit_ch[1])
        u["conv3_w"] = conv_w(unit_ch[2], unit_ch[1], unit_ksize[2])
        units.append(u)
        unit_in = unit_ch[-1]

    params = {"units": units, "stride": stride, "blk_bn": bn(unit_in)}
    if in_ch != unit_ch[-1] or stride != 1:
        params["shortcut_w"] = conv_w(unit_ch[-1], in_ch, 1)
    else:
        params["shortcut_w"] = None
    return params


# ---------------------------------------------------------------------------

if __name__ == "__main__":
    key = jax.random.PRNGKey(0)
    in_ch = 4
    unit_ksize = (1, 3, 1)
    unit_ch = (4, 4, 8)
    unit_count = 2
    stride = 2

    params = init_params(key, in_ch, unit_ksize, unit_ch, unit_count, stride)
    x = jax.random.normal(jax.random.fold_in(key, 123), (2, in_ch, 16, 16), jnp.float32)

    out = jax.block_until_ready(residual_block_forward(x, params))

    # bf16-matched reference (same cast / fold points, f32 accumulation): tight check.
    ref_bf16 = reference_forward(x, params, compute_dtype=jnp.bfloat16)
    # Pure f32 reference: loose sanity check of the overall semantics.
    ref_f32 = reference_forward(x, params, compute_dtype=jnp.float32)

    assert out.shape == ref_f32.shape, (out.shape, ref_f32.shape)
    err_matched = float(jnp.max(jnp.abs(out - ref_bf16)))
    err_f32 = float(jnp.max(jnp.abs(out - ref_f32)))
    ref_scale = float(jnp.max(jnp.abs(ref_f32))) + 1e-6
    assert err_matched < 2e-2, f"mismatch vs bf16-matched reference: {err_matched}"
    assert err_f32 < 0.05 * ref_scale + 5e-2, f"mismatch vs f32 reference: {err_f32}"

    print("KERNEL_OK")
</pallas_src>

<mosaic_0001>
module attributes {stable_mosaic.version = 11 : i64} {
  func.func @_matmul_conv_kernel(%arg0: i32, %arg1: i32, %arg2: i32, %arg3: memref<128x128xbf16, #tpu.memory_space<vmem>>, %arg4: memref<128x128xbf16, #tpu.memory_space<vmem>>, %arg5: memref<1x128xf32, #tpu.memory_space<vmem>>, %arg6: memref<128x128xbf16, #tpu.memory_space<vmem>>) attributes {dimension_semantics = [#tpu.dimension_semantics<parallel>, #tpu.dimension_semantics<parallel>, #tpu.dimension_semantics<arbitrary>], iteration_bounds = array<i64: 1, 1, 1>, scalar_prefetch = 0 : i64, scratch_operands = 0 : i64, tpu.core_type = #tpu.core_type<tc>, window_params = [{transform_indices = @transform_0, window_bounds = array<i64: 128, 128>}, {transform_indices = @transform_1, window_bounds = array<i64: 128, 128>}, {transform_indices = @transform_2, window_bounds = array<i64: 1, 128>}, {transform_indices = @transform_3, window_bounds = array<i64: 128, 128>}]} {
    %c0 = arith.constant 0 : index
    %c0_0 = arith.constant 0 : index
    %0 = vector.load %arg3[%c0, %c0_0] : memref<128x128xbf16, #tpu.memory_space<vmem>>, vector<128x128xbf16>
    %c0_1 = arith.constant 0 : index
    %c0_2 = arith.constant 0 : index
    %1 = vector.load %arg4[%c0_1, %c0_2] : memref<128x128xbf16, #tpu.memory_space<vmem>>, vector<128x128xbf16>
    %cst = arith.constant dense<0.000000e+00> : vector<128x128xf32>
    %2 = tpu.matmul %0, %1, %cst {dimension_numbers = #tpu.dot_dimension_numbers<[1], [0], [0], [1], [0, 0, 1, 1], [], []>} : vector<128x128xbf16>, vector<128x128xbf16>, vector<128x128xf32> -> vector<128x128xf32>
    %c0_3 = arith.constant 0 : index
    %c0_4 = arith.constant 0 : index
    %3 = vector.load %arg5[%c0_3, %c0_4] : memref<1x128xf32, #tpu.memory_space<vmem>>, vector<1x128xf32>
    %4 = vector.broadcast %3 : vector<1x128xf32> to vector<128x128xf32>
    %5 = arith.addf %2, %4 : vector<128x128xf32>
    %6 = arith.truncf %5 : vector<128x128xf32> to vector<128x128xbf16>
    %c0_5 = arith.constant 0 : index
    %c0_6 = arith.constant 0 : index
    %7 = vector.load %arg6[%c0_5, %c0_6] : memref<128x128xbf16, #tpu.memory_space<vmem>>, vector<128x128xbf16>
    tpu.vector_store %arg6[%c0_5, %c0_6], %6 {strides = array<i32>} : memref<128x128xbf16, #tpu.memory_space<vmem>>, vector<128x128xbf16>,
    return
  }
  func.func @transform_0(%arg0: i32, %arg1: i32, %arg2: i32) -> (i32, i32) {
    %c0_i32 = arith.constant 0 : i32
    return %arg1, %arg2 : i32, i32
  }
  func.func @transform_1(%arg0: i32, %arg1: i32, %arg2: i32) -> (i32, i32) {
    %c0_i32 = arith.constant 0 : i32
    return %arg2, %arg0 : i32, i32
  }
  func.func @transform_2(%arg0: i32, %arg1: i32, %arg2: i32) -> (i32, i32) {
    %c0_i32 = arith.constant 0 : i32
    %c0_i32_0 = arith.constant 0 : i32
    return %c0_i32, %arg0 : i32, i32
  }
  func.func @transform_3(%arg0: i32, %arg1: i32, %arg2: i32) -> (i32, i32) {
    %c0_i32 = arith.constant 0 : i32
    return %arg1, %arg0 : i32, i32
  }
}

</mosaic_0001>

<bundles_post_ra>
// kernel: tpu_custom_call.1
= control target key start
LH: loop header
LB: loop body
LE: loop exit
PB: predicated region body
PF: predicated region fallthrough
CT: control target
= control target key end

     0   :  { %8 = vsyncpa [#allocation3], 0  ;;  %s751_s0 = inlined_call_operand.hbm [shape: bf16[128,128], index: 0, kind: input, shape index: {}]   ;;  %s752_s1 = inlined_call_operand.hbm [shape: bf16[128,128], index: 1, kind: input, shape index: {}]   ;;  %s753_s2 = inlined_call_operand.hbm [shape: f32[1,128], index: 2, kind: input, shape index: {}]   ;;  %s754_s3 = inlined_call_operand.hbm [shape: bf16[128,128], index: 3, kind: output, shape index: {}]  }
   0x1   :  { %9 = vsyncpa [#allocation6], 0 }
   0x2   :  { %10 = vsyncpa [#allocation4], 0  ;;  %s661_s12 = smov [#allocation5]   ;;  %s662_s14 = smov [#allocation2]  }
   0x3   :  { %s28_s13 = sshll.u32 %s661_s12, 4  ;;  %s16_s15 = sshll.u32 %s662_s14, 4  ;;  %s29_s13 = int_to_ptr.vmem [resolvable:$true] %s28_s13  ;;  %s687_s15 = int_to_ptr.vmem [resolvable:$true] %s16_s15 }
   0x4   :  { %s567_s18 = scalar_lea.hbm %s752_s1, 1024 }
   0x5   :  { %p568_p0 = scmp.ne.s32.totalorder %s752_s1, %s567_s18  ;;  %p571_p1 = scmp.lt.u32.totalorder %s567_s18, %s752_s1 }
   0x7   :  { %p573_p2 = pnand %p571_p1, %p568_p0 }
   0x9   :  { %576 = shalt.err (!%p573_p2)
}
   0xa   :  { %s577_s23 = scalar_lea.vmem %s29_s13, 1024  ;;  %p582_p4 = scmp.lt.s32.totalorder %s29_s13, %s29_s13 }
   0xb   :  { %p578_p3 = scmp.ne.s32.totalorder %s29_s13, %s577_s23  ;;  %p583_p5 = scmp.lt.s32.totalorder %s577_s23, %s577_s23 }
   0xd   :  { %p584_p6 = por %p583_p5, %p582_p4 }
   0xf   :  { %p585_p7 = pnand %p584_p6, %p578_p3 }
  0x11   :  { %588 = shalt.err (!%p585_p7)
}
  0x12   :  { %s663_s24 = smov 64   ;;  %s664_s25 = smov 4  }
  0x13   :  { %34 = dma.hbm_to_vmem [thread:$0]  %s752_s1, 1024, %s29_s13, [#allocation6], %s663_s24, %s663_s24, %s664_s25  }
  0x14   :  { %s589_s30 = scalar_lea.hbm %s751_s0, 1024 }
  0x15   :  { %p590_p8 = scmp.ne.s32.totalorder %s751_s0, %s589_s30  ;;  %p593_p9 = scmp.lt.u32.totalorder %s589_s30, %s751_s0 }
  0x17   :  { %p595_p10 = pnand %p593_p9, %p590_p8 }
  0x19   :  { %598 = shalt.err (!%p595_p10)
}
  0x1a   :  { %s599_s8 = scalar_lea.vmem %s687_s15, 1024  ;;  %p604_p12 = scmp.lt.s32.totalorder %s687_s15, %s687_s15 }
  0x1b   :  { %p600_p11 = scmp.ne.s32.totalorder %s687_s15, %s599_s8  ;;  %p605_p13 = scmp.lt.s32.totalorder %s599_s8, %s599_s8 }
  0x1d   :  { %p606_p0 = por %p605_p13, %p604_p12 }
  0x1f   :  { %p607_p1 = pnand %p606_p0, %p600_p11 }
  0x21   :  { %610 = shalt.err (!%p607_p1)
}
  0x22   :  { %22 = dma.hbm_to_vmem [thread:$0]  %s751_s0, 1024, %s687_s15, [#allocation3], %s663_s24, %s663_s24, %s664_s25  }
  0x23   :  { %s665_s10 = smov [#allocation7]   ;;  %s611_s14 = scalar_lea.hbm %s753_s2, 16 }
  0x24   :  { %s41_s11 = sshll.u32 %s665_s10, 4  ;;  %p612_p2 = scmp.ne.s32.totalorder %s753_s2, %s611_s14  ;;  %s42_s11 = int_to_ptr.vmem [resolvable:$true] %s41_s11 }
  0x25   :  { %p615_p3 = scmp.lt.u32.totalorder %s611_s14, %s753_s2 }
  0x27   :  { %p617_p4 = pnand %p615_p3, %p612_p2 }
  0x29   :  { %620 = shalt.err (!%p617_p4)
}
  0x2a   :  { %s621_s20 = scalar_lea.vmem %s42_s11, 16  ;;  %s625_s0 = scalar_lea.vmem %s42_s11, 32 }
  0x2b   :  { %p622_p5 = scmp.ne.s32.totalorder %s42_s11, %s621_s20  ;;  %p626_p6 = scmp.lt.s32.totalorder %s42_s11, %s42_s11 }
  0x2c   :  { %p627_p7 = scmp.lt.s32.totalorder %s625_s0, %s621_s20 }
  0x2e   :  { %p628_p8 = por %p627_p7, %p626_p6 }
  0x30   :  { %p629_p9 = pnand %p628_p8, %p622_p5 }
  0x32   :  { %632 = shalt.err (!%p629_p9)
}
  0x33   :  { %44 = dma.hbm_to_vmem [thread:$0]  %s753_s2, 16, %s42_s11, [#allocation6]  }
  0x34   :  { %655 = dma.done.wait [#allocation3], 1024  }
  0x35   :  { %656 = vsyncadd [#allocation3], 4294966272 }
  0x36   :  { %657 = dma.done.wait [#allocation6], 1040  }
  0x37   :  { %658 = vsyncadd [#allocation6], 4294966256  ;;  %v551_v0 = vld [vmem:[#allocation5] sm:$0xff]   ;;  %v552_v1 = vld [vmem:[#allocation5 + $0x8] sm:$0xff]   ;;  %s666_s2 = smov [#allocation8]  }
  0x38   :  { %497 = vmatprep.subr.bf16.mxu0 %v551_v0  ;;  %529 = vmatprep.subr.bf16.mxu1 %v551_v0  ;;  %v553_v2 = vld [vmem:[#allocation5 + $0x10] sm:$0xff]   ;;  %v554_v3 = vld [vmem:[#allocation5 + $0x18] sm:$0xff]   ;;  %v559_v4 = vld [vmem:[#allocation2] sm:$0xff]   ;;  %s372_s22 = sshll.u32 %s666_s2, 4  ;;  %s373_s22 = int_to_ptr.vmem [resolvable:$true] %s372_s22 }
  0x39   :  { %498 = vmatpush3.bf16.msra.mxu0 %v551_v0  ;;  %537 = vmatpush3.bf16.msra.mxu1 %v551_v0  ;;  %v560_v5 = vld [vmem:[#allocation2 + $0x20] sm:$0xff]   ;;  %v556_v7 = vld [vmem:[#allocation5 + $0x28] sm:$0xff]   ;;  %v557_v8 = vld [vmem:[#allocation5 + $0x30] sm:$0xff]   ;;  %s633_s23 = scalar_lea.vmem %s373_s22, 1024  ;;  %p638_p11 = scmp.lt.s32.totalorder %s373_s22, %s373_s22 }
  0x3a   :  { %499 = vmatprep.subr.bf16.mxu0 %v552_v1  ;;  %530 = vmatprep.subr.bf16.mxu1 %v552_v1  ;;  %v555_v6 = vld [vmem:[#allocation5 + $0x20] sm:$0xff]   ;;  %v558_v9 = vld [vmem:[#allocation5 + $0x38] sm:$0xff]   ;;  %v561_v10 = vld [vmem:[#allocation2 + $0x8] sm:$0xff]   ;;  %p634_p10 = scmp.ne.s32.totalorder %s373_s22, %s633_s23  ;;  %p639_p12 = scmp.lt.s32.totalorder %s633_s23, %s633_s23 }
  0x3b   :  { %513 = vmatprep.mubr.bf16.mxu0 %v559_v4  ;;  %521 = vmatprep.mubr.bf16.mxu1 %v560_v5  ;;  %v562_v11 = vld [vmem:[#allocation2 + $0x28] sm:$0xff]   ;;  %v563_v12 = vld [vmem:[#allocation2 + $0x10] sm:$0xff]   ;;  %v565_v14 = vld [vmem:[#allocation2 + $0x18] sm:$0xff]  }
  0x3c   :  { %v564_v13 = vld [vmem:[#allocation2 + $0x30] sm:$0xff]   ;;  %v566_v15 = vld [vmem:[#allocation2 + $0x38] sm:$0xff]   ;;  %v385_v17 = vld [vmem:[#allocation7] ss:$0 sm:$0xff]  ;;  %p640_p13 = por %p639_p12, %p638_p11 }
  0x3d   :  { %500 = vmatpush3.bf16.msra.mxu0 %v552_v1  ;;  %538 = vmatpush3.bf16.msra.mxu1 %v552_v1 }
  0x3e   :  { %501 = vmatprep.subr.bf16.mxu0 %v553_v2  ;;  %531 = vmatprep.subr.bf16.mxu1 %v553_v2  ;;  %p641_p0 = pnand %p640_p13, %p634_p10 }
  0x41   :  { %502 = vmatpush3.bf16.msra.mxu0 %v553_v2  ;;  %539 = vmatpush3.bf16.msra.mxu1 %v553_v2 }
  0x42   :  { %503 = vmatprep.subr.bf16.mxu0 %v554_v3  ;;  %532 = vmatprep.subr.bf16.mxu1 %v554_v3 }
  0x45   :  { %504 = vmatpush3.bf16.msra.mxu0 %v554_v3  ;;  %540 = vmatpush3.bf16.msra.mxu1 %v554_v3 }
  0x46   :  { %505 = vmatprep.subr.bf16.mxu0 %v555_v6  ;;  %533 = vmatprep.subr.bf16.mxu1 %v555_v6 }
  0x49   :  { %506 = vmatpush3.bf16.msra.mxu0 %v555_v6  ;;  %541 = vmatpush3.bf16.msra.mxu1 %v555_v6 }
  0x4a   :  { %507 = vmatprep.subr.bf16.mxu0 %v556_v7  ;;  %534 = vmatprep.subr.bf16.mxu1 %v556_v7 }
  0x4d   :  { %508 = vmatpush3.bf16.msra.mxu0 %v556_v7  ;;  %542 = vmatpush3.bf16.msra.mxu1 %v556_v7 }
  0x4e   :  { %509 = vmatprep.subr.bf16.mxu0 %v557_v8  ;;  %535 = vmatprep.subr.bf16.mxu1 %v557_v8 }
  0x51   :  { %510 = vmatpush3.bf16.msra.mxu0 %v557_v8  ;;  %543 = vmatpush3.bf16.msra.mxu1 %v557_v8 }
  0x52   :  { %511 = vmatprep.subr.bf16.mxu0 %v558_v9  ;;  %536 = vmatprep.subr.bf16.mxu1 %v558_v9 }
  0x55   :  { %512 = vmatpush3.bf16.msra.mxu0 %v558_v9  ;;  %544 = vmatpush3.bf16.msra.mxu1 %v558_v9 }
  0x58   :  { %514 = vmatmul.mubr.bf16.vlgmr.msra.gmra.mrb[0].mxu0 %v561_v10  ;;  %522 = vmatmul.mubr.bf16.vlgmr.msra.gmra.mrb[0].mxu1 %v562_v11 }
  0x59   :  { %517 = vmatprep.mubr.bf16.mxu0 %v563_v12  ;;  %525 = vmatprep.mubr.bf16.mxu1 %v564_v13 }
  0x60   :  { %518 = vmatmul.mubr.bf16.gmra.mrb[4].mxu0 %v565_v14  ;;  %526 = vmatmul.mubr.bf16.gmra.mrb[4].mxu1 %v566_v15 }
 0x12b   :  { %v515_v16 = vpop.f32.mrb[0].mxu0  ;;  %v523_v18 = vpop.f32.mrb[0].mxu1 }
 0x12c   :  { %v224_v19 = vpop.f32.mrb[1].mxu0  ;;  %v256_v20 = vpop.f32.mrb[1].mxu1  ;;  %v233_v23 = vadd.f32 %v515_v16, %v385_v17  ;;  %v265_v24 = vadd.f32 %v523_v18, %v385_v17 }
 0x12d   :  { %v516_v21 = vpop.f32.mrb[2].mxu0  ;;  %v524_v22 = vpop.f32.mrb[2].mxu1  ;;  %v225_v29 = vadd.f32 %v385_v17, %v224_v19  ;;  %v257_v30 = vadd.f32 %v385_v17, %v256_v20 }
 0x12e   :  { %v236_v25 = vadd.f32 %v516_v21, %v385_v17  ;;  %v268_v26 = vadd.f32 %v524_v22, %v385_v17  ;;  %v227_v27 = vpop.f32.mrb[3].mxu0  ;;  %v259_v28 = vpop.f32.mrb[3].mxu1 }
 0x12f   :  { %v228_v31 = vadd.f32 %v385_v17, %v227_v27  ;;  %v260_v32 = vadd.f32 %v385_v17, %v259_v28 }
 0x130   :  { %v442_v33 = vpack.c.bf16 %v236_v25, %v233_v23  ;;  %v462_v34 = vpack.c.bf16 %v268_v26, %v265_v24 }
 0x131   :  { %v437_v35 = vpack.c.bf16 %v228_v31, %v225_v29  ;;  %v457_v36 = vpack.c.bf16 %v260_v32, %v257_v30 }
 0x132   :  { %474 = vst [vmem:[#allocation8 + $0x8] sm:$0xff] %v442_v33   ;;  %478 = vst [vmem:[#allocation8 + $0x28] sm:$0xff] %v462_v34  }
 0x133   :  { %438 = vst [vmem:[#allocation8] sm:$0xff] %v437_v35   ;;  %477 = vst [vmem:[#allocation8 + $0x20] sm:$0xff] %v457_v36   ;;  %v519_v37 = vpop.f32.mrb[4].mxu0  ;;  %v527_v38 = vpop.f32.mrb[4].mxu1 }
 0x134   :  { %v240_v39 = vpop.f32.mrb[5].mxu0  ;;  %v272_v40 = vpop.f32.mrb[5].mxu1  ;;  %v249_v43 = vadd.f32 %v519_v37, %v385_v17  ;;  %v281_v44 = vadd.f32 %v527_v38, %v385_v17 }
 0x135   :  { %v520_v41 = vpop.f32.mrb[6].mxu0  ;;  %v528_v42 = vpop.f32.mrb[6].mxu1  ;;  %v241_v49 = vadd.f32 %v385_v17, %v240_v39  ;;  %v273_v50 = vadd.f32 %v385_v17, %v272_v40 }
 0x136   :  { %v252_v45 = vadd.f32 %v520_v41, %v385_v17  ;;  %v284_v46 = vadd.f32 %v528_v42, %v385_v17  ;;  %v243_v47 = vpop.f32.mrb[7].mxu0  ;;  %v275_v48 = vpop.f32.mrb[7].mxu1 }
 0x137   :  { %v244_v51 = vadd.f32 %v385_v17, %v243_v47  ;;  %v276_v52 = vadd.f32 %v385_v17, %v275_v48 }
 0x138   :  { %v452_v53 = vpack.c.bf16 %v252_v45, %v249_v43  ;;  %v472_v54 = vpack.c.bf16 %v284_v46, %v281_v44 }
 0x139   :  { %v447_v55 = vpack.c.bf16 %v244_v51, %v241_v49  ;;  %v467_v56 = vpack.c.bf16 %v276_v52, %v273_v50 }
 0x13a   :  { %476 = vst [vmem:[#allocation8 + $0x18] sm:$0xff] %v452_v53   ;;  %480 = vst [vmem:[#allocation8 + $0x38] sm:$0xff] %v472_v54  }
 0x13b   :  { %475 = vst [vmem:[#allocation8 + $0x10] sm:$0xff] %v447_v55   ;;  %479 = vst [vmem:[#allocation8 + $0x30] sm:$0xff] %v467_v56  }
 0x13c   :  { %644 = shalt.err (!%p641_p0)
}
 0x13d   :  { %s645_s28 = scalar_lea.hbm %s754_s3, 1024 }
 0x13e   :  { %p646_p1 = scmp.ne.s32.totalorder %s754_s3, %s645_s28  ;;  %p649_p2 = scmp.lt.u32.totalorder %s645_s28, %s754_s3 }
 0x140   :  { %p651_p3 = pnand %p649_p2, %p646_p1 }
 0x142   :  { %654 = shalt.err (!%p651_p3)
}
 0x143   :  { %378 = dma.vmem_to_hbm [thread:$0]  %s373_s22, 1024, %s754_s3, [#allocation4], %s663_s24, %s663_s24, %s664_s25  }
 0x144   :  { %659 = dma.done.wait [#allocation4], 1024  }
 0x145   :  { %660 = vsyncadd [#allocation4], 4294966272 }
 0x146   :  { %382 = vsyncpa [#allocation3], 1 }
 0x147   :  { %383 = vsyncpa [#allocation6], 1 }
 0x148   :  { %384 = vsyncpa [#allocation4], 1 }

</bundles_post_ra>
